<compile_context>
chip_gen: v7x
topology: tpu7x:2x2x1
jax: 0.10.0
libtpu: 0.0.40
codegen_flags: <defaults>
</compile_context>

<pallas_src>
import functools

import jax
import jax.numpy as jnp
from jax.experimental import pallas as pl
from jax.experimental.pallas import tpu as pltpu

QUANT_BITS = 8
QMAX = float(2 ** (QUANT_BITS - 1) - 1)  # 127.0
_EPS = 1e-8


# ---------------------------------------------------------------------------
# TPU-generation detection: int8 MXU path (v5e/v6e), VMEM limits.
# ---------------------------------------------------------------------------
def _device_kind():
    try:
        return (jax.devices()[0].device_kind or "").lower()
    except Exception:
        return ""


@functools.lru_cache(maxsize=1)
def _vmem_limit_bytes():
    kind = _device_kind()
    if "v7" in kind:
        return 48 * 1024 * 1024      # v7x: only 64 MiB physical VMEM -> headroom
    if "v5" in kind or "v6" in kind:
        return 96 * 1024 * 1024      # v5e / v6e: 128 MiB physical VMEM
    return 64 * 1024 * 1024          # conservative default for other chips


@functools.lru_cache(maxsize=1)
def _int8_codes_supported():
    """True iff this chip should take the int8 MXU path (v5e/v6e), verified by a probe."""
    kind = _device_kind()
    # v7x MXU has no integer path and fp8 cannot represent the +/-127 code range.
    if not (("v5" in kind or "v6" in kind) and "v7" not in kind):
        return False

    def probe(w_ref, p_ref, o_ref):
        p = jnp.round(p_ref[...]).astype(jnp.int8)
        acc = jnp.dot(w_ref[...], p, preferred_element_type=jnp.int32)
        o_ref[...] = acc.astype(jnp.float32)

    try:
        f = pl.pallas_call(probe, out_shape=jax.ShapeDtypeStruct((8, 256), jnp.float32))
        jax.block_until_ready(f(jnp.ones((8, 64), jnp.int8),
                                jnp.ones((64, 256), jnp.float32)))
        return True
    except Exception:
        return False


# ---------------------------------------------------------------------------
# Pallas kernels
# ---------------------------------------------------------------------------
def _fused_conv_kernel(scales_ref, p_ref, w_ref, b_ref, out_ref, bmax_ref, *,
                       quant_input, code_dtype, acc_pref):
    """Fused (input fake-quant) -> code GEMM -> scale + bias epilogue + running max.

    scales_ref : SMEM (2,) f32     [1/s_x, s_x * s_w]
    p_ref      : VMEM (1, K, T)    raw (un-quantized) transposed im2col patches (f32)
    w_ref      : VMEM (Cout, K)    weight codes (int8 / bf16 / f32)
    b_ref      : VMEM (Cout, 1)    f32 bias
    out_ref    : VMEM (1, Cout, T) f32 conv output (lane-dense T)
    bmax_ref   : VMEM (1, 8, 128)  per-batch running max|out| (resident across the
                                   spatial grid axis, written back once per batch)
    """
    m = pl.program_id(1)

    p = p_ref[0]                                             # (K, T) f32
    if quant_input:
        # s_x = max|x| / 127 -> |round(p / s_x)| <= 127 up to f32 ULPs, so no clip.
        p = jnp.round(p * scales_ref[0]).astype(code_dtype)

    acc = jnp.dot(w_ref[...], p, preferred_element_type=acc_pref)   # (Cout, T)
    y = acc.astype(jnp.float32) * scales_ref[1] + b_ref[...]        # dequant + bias

    out_ref[0] = y

    # Running per-batch max|out| for the output quantizer (no extra HBM pass).
    @pl.when(m == 0)
    def _():
        bmax_ref[...] = jnp.zeros_like(bmax_ref)
    bmax_ref[...] = jnp.maximum(bmax_ref[...],
                                jnp.zeros_like(bmax_ref) + jnp.max(jnp.abs(y)))


def _quant_dequant_kernel(scales_ref, x_ref, o_ref):
    """Per-tensor quantize-dequantize with a precomputed scale (in-place, aliased).

    scales_ref : SMEM (2,) f32  [1/s, s]  with s = max|x| / 127 over these values,
                 so |round(x / s)| <= 127 up to ULPs and the clip is dropped.
    """
    o_ref[...] = jnp.round(x_ref[...] * scales_ref[0]) * scales_ref[1]


# ---------------------------------------------------------------------------
# Byte-accurate tile selection
# ---------------------------------------------------------------------------
def _pick_spatial_tile(hw, k_pad, cout, w_bytes, budget_bytes):
    """Largest lane-dense spatial tile T dividing hw whose per-step VMEM fits."""
    if hw % 128 != 0:
        return hw  # odd spatial size: single (masked) block -- legal, perf cliff only

    def fits(t):
        blocks = 2 * (k_pad * t * 4) + 2 * (cout * t * 4)   # dbl-buffered patches + out
        fixed = 2 * (cout * k_pad * w_bytes) + 2 * (cout * 4) + 2 * (8 * 128 * 4)
        return blocks + fixed <= budget_bytes

    best = 128
    t = 128
    while t <= hw:
        if hw % t == 0 and fits(t):
            best = t
        t += 128
    return best


# ---------------------------------------------------------------------------
# pallas_call wrappers
# ---------------------------------------------------------------------------
def _fused_conv(patches, w_mat, bias, scales_in, *, quant_input, code_dtype,
                T, vmem_limit):
    B, K_pad, HW = patches.shape
    Cout = w_mat.shape[0]
    nm = HW // T
    acc_pref = jnp.int32 if code_dtype == jnp.int8 else jnp.float32

    kernel = functools.partial(_fused_conv_kernel, quant_input=quant_input,
                               code_dtype=code_dtype, acc_pref=acc_pref)
    return pl.pallas_call(
        kernel,
        out_shape=(
            jax.ShapeDtypeStruct((B, Cout, HW), jnp.float32),
            jax.ShapeDtypeStruct((B, 8, 128), jnp.float32),
        ),
        grid_spec=pltpu.PrefetchScalarGridSpec(
            num_scalar_prefetch=0,
            grid=(B, nm),
            in_specs=[
                pl.BlockSpec(memory_space=pltpu.MemorySpace.SMEM),      # scales
                pl.BlockSpec((1, K_pad, T), lambda b, m: (b, 0, m)),    # patches
                pl.BlockSpec((Cout, K_pad), lambda b, m: (0, 0)),       # weight codes
                pl.BlockSpec((Cout, 1), lambda b, m: (0, 0)),           # bias
            ],
            out_specs=(
                pl.BlockSpec((1, Cout, T), lambda b, m: (b, 0, m)),     # conv out
                pl.BlockSpec((1, 8, 128), lambda b, m: (b, 0, 0)),      # max|out|
            ),
        ),
        compiler_params=pltpu.CompilerParams(
            # bmax accumulates across the spatial axis -> "arbitrary"; the batch
            # axis stays "parallel" so v7x megacore can shard it (>=2 steps).
            dimension_semantics=("parallel", "arbitrary"),
            vmem_limit_bytes=vmem_limit,
        ),
    )(scales_in, patches, w_mat, bias.reshape(Cout, 1))


def _output_fake_quant(y3, scales_out, *, vmem_limit):
    B, Cout, HW = y3.shape
    rows = B * Cout
    y2 = y3.reshape(rows, HW)

    # One (or a few) large lane-dense blocks over the flattened output slab.
    budget = (vmem_limit * 3) // 4
    rt = rows
    if 4 * rows * HW * 4 > budget:
        cand = 8
        while cand < rows:
            if rows % cand == 0 and 4 * cand * HW * 4 <= budget:
                rt = cand
            cand += 8
    nr = rows // rt if rows % rt == 0 else 1
    if rows % rt != 0:
        rt = rows

    out = pl.pallas_call(
        _quant_dequant_kernel,
        out_shape=jax.ShapeDtypeStruct((rows, HW), jnp.float32),
        grid_spec=pltpu.PrefetchScalarGridSpec(
            num_scalar_prefetch=0,
            grid=(nr,),
            in_specs=[
                pl.BlockSpec(memory_space=pltpu.MemorySpace.SMEM),      # scales
                pl.BlockSpec((rt, HW), lambda r: (r, 0)),
            ],
            out_specs=pl.BlockSpec((rt, HW), lambda r: (r, 0)),
        ),
        # In-place QDQ: alias the conv output buffer (no extra HBM allocation).
        input_output_aliases={1: 0},
        compiler_params=pltpu.CompilerParams(
            dimension_semantics=("parallel",),
            vmem_limit_bytes=vmem_limit,
        ),
    )(scales_out, y2)
    return out.reshape(B, Cout, HW)


# ---------------------------------------------------------------------------
# Glue (im2col / scales) in plain JAX — all fused under jit
# ---------------------------------------------------------------------------
def _im2col_T(x, kh, kw, pad):
    """x (B, C, H, W) -> transposed patches (B, C*kh*kw, H*W), stride 1.

    K ordering is c*(kh*kw) + (i*kw + j), matching weight.reshape(Cout, C*kh*kw).
    """
    B, C, H, W = x.shape
    xp = jnp.pad(x, ((0, 0), (0, 0), (pad, pad), (pad, pad)))
    cols = [xp[:, :, i:i + H, j:j + W] for i in range(kh) for j in range(kw)]
    p = jnp.stack(cols, axis=2)                 # (B, C, kh*kw, H, W)
    return p.reshape(B, C * kh * kw, H * W)


def _scale_from_maxabs(maxabs):
    return jnp.maximum(maxabs, _EPS) / QMAX


# ---------------------------------------------------------------------------
# QuantizerModuleWrapper.forward equivalent
# ---------------------------------------------------------------------------
def quantizer_module_wrapper_forward(x, weight, bias, quant_types):
    """Mirrors QuantizerModuleWrapper.forward around a Conv2d(stride=1, same pad)."""
    return _forward_jit(x, weight, bias, tuple(quant_types),
                        _int8_codes_supported(), _vmem_limit_bytes())


@functools.partial(jax.jit, static_argnums=(3, 4, 5))
def _forward_jit(x, weight, bias, quant_types, use_int8, vmem_limit):
    B, Cin, H, W = x.shape
    Cout, _, KH, KW = weight.shape
    pad = KH // 2
    HW = H * W

    quant_input = 'input' in quant_types
    quant_weight = 'weight' in quant_types
    quant_output = 'output' in quant_types

    x = x.astype(jnp.float32)
    weight = weight.astype(jnp.float32)
    bias = bias.astype(jnp.float32)
    one = jnp.asarray(1.0, jnp.float32)

    # Code dtype for the MXU operands:
    #   both sides quantized -> int8 codes (v5e/v6e) or exact bf16 codes (v7x etc.)
    #   only one side        -> f32 codes (exact; avoids mixed-precision dots)
    both = quant_input and quant_weight
    code_dtype = (jnp.int8 if use_int8 else jnp.bfloat16) if both else jnp.float32

    K = Cin * KH * KW
    k_mult = 32 if code_dtype == jnp.int8 else 8
    K_pad = ((K + k_mult - 1) // k_mult) * k_mult

    # bf16 codes with f32 accumulation are exact only while K*127^2 < 2^24.
    if code_dtype == jnp.bfloat16 and K_pad * QMAX * QMAX >= 2.0 ** 24:
        code_dtype = jnp.float32

    # --- per-tensor scales: tiny reductions, done in plain JAX (no extra pass)
    if quant_input:
        s_x = _scale_from_maxabs(jnp.max(jnp.abs(x)))
        inv_sx = one / s_x
    else:
        s_x, inv_sx = one, one

    w2 = jnp.pad(weight.reshape(Cout, K), ((0, 0), (0, K_pad - K)))
    if quant_weight:
        s_w = _scale_from_maxabs(jnp.max(jnp.abs(weight)))
        w_mat = jnp.clip(jnp.round(w2 * (one / s_w)), -QMAX, QMAX).astype(code_dtype)
    else:
        s_w = one
        w_mat = w2                               # raw f32 weight

    scales_in = jnp.stack([inv_sx, s_x * s_w])

    # --- transposed im2col (B, K_pad, H*W), zero-padded along K
    # TODO(synk): stream the padded input in-kernel for large convs (see header).
    patches = jnp.pad(_im2col_T(x, KH, KW, pad), ((0, 0), (0, K_pad - K), (0, 0)))

    T = _pick_spatial_tile(HW, K_pad, Cout, jnp.dtype(w_mat.dtype).itemsize,
                           (vmem_limit * 3) // 4)

    out3, bmax = _fused_conv(patches, w_mat, bias, scales_in,
                             quant_input=quant_input, code_dtype=code_dtype,
                             T=T, vmem_limit=vmem_limit)

    if quant_output:
        s_o = _scale_from_maxabs(jnp.max(bmax))
        scales_out = jnp.stack([one / s_o, s_o])
        out3 = _output_fake_quant(out3, scales_out, vmem_limit=vmem_limit)

    return out3.reshape(B, Cout, H, W)


# ---------------------------------------------------------------------------
# Pure-JAX reference (silent correctness check)
# ---------------------------------------------------------------------------
def _ref_fake_quant(t):
    t = t.astype(jnp.float32)
    s = jnp.maximum(jnp.max(jnp.abs(t)), _EPS) / QMAX
    return jnp.clip(jnp.round(t * (1.0 / s)), -QMAX, QMAX) * s


def _ref_forward(x, weight, bias, quant_types):
    if 'input' in quant_types:
        x = _ref_fake_quant(x)
    if 'weight' in quant_types:
        weight = _ref_fake_quant(weight)
    out = jax.lax.conv_general_dilated(
        x, weight, window_strides=(1, 1), padding=((1, 1), (1, 1)),
        dimension_numbers=('NCHW', 'OIHW', 'NCHW'),
        precision=jax.lax.Precision.HIGHEST)
    out = out + bias.reshape(1, -1, 1, 1)
    if 'output' in quant_types:
        out = _ref_fake_quant(out)
    return out


if __name__ == "__main__":
    key = jax.random.PRNGKey(0)
    kx, kw_, kb = jax.random.split(key, 3)

    B, Cin, H, W = 2, 4, 16, 16
    Cout, KH, KW = 8, 3, 3

    x = jax.random.normal(kx, (B, Cin, H, W), dtype=jnp.float32)
    weight = jax.random.normal(kw_, (Cout, Cin, KH, KW), dtype=jnp.float32) * 0.1
    bias = jax.random.normal(kb, (Cout,), dtype=jnp.float32) * 0.1

    # 1) Fused quantized conv (no output quant) vs f32 reference: tight check.
    qt = ('input', 'weight')
    out_nq = jax.block_until_ready(quantizer_module_wrapper_forward(x, weight, bias, qt))
    ref_nq = _ref_forward(x, weight, bias, qt)
    assert out_nq.shape == (B, Cout, H, W)
    assert jnp.allclose(out_nq, ref_nq, atol=1e-4, rtol=1e-4), "conv mismatch vs reference"

    # 2) Full wrapper path (input + weight + output quant). The code GEMM
    #    accumulates in a different order than the f32 reference conv, so a value
    #    can land just across a rounding boundary of the final output quantizer;
    #    allow at most one output quantization step of difference.
    qt = ('input', 'weight', 'output')
    out = jax.block_until_ready(quantizer_module_wrapper_forward(x, weight, bias, qt))
    ref = _ref_forward(x, weight, bias, qt)
    assert out.shape == (B, Cout, H, W)
    step = float(jnp.max(jnp.abs(ref))) / QMAX
    err = float(jnp.max(jnp.abs(out - ref)))
    assert err <= step * 1.01 + 1e-4, f"output mismatch: err={err}, quant step={step}"

    print("KERNEL_OK")
</pallas_src>

<mosaic_0001>
module attributes {stable_mosaic.version = 11 : i64} {
  func.func @_fused_conv_kernel(%arg0: i32, %arg1: i32, %arg2: memref<2xf32, #tpu.memory_space<smem>>, %arg3: memref<1x40x256xf32, #tpu.memory_space<vmem>>, %arg4: memref<8x40xbf16, #tpu.memory_space<vmem>>, %arg5: memref<8x1xf32, #tpu.memory_space<vmem>>, %arg6: memref<1x8x256xf32, #tpu.memory_space<vmem>>, %arg7: memref<1x8x128xf32, #tpu.memory_space<vmem>>) attributes {dimension_semantics = [#tpu.dimension_semantics<parallel>, #tpu.dimension_semantics<arbitrary>], iteration_bounds = array<i64: 2, 1>, scalar_prefetch = 0 : i64, scratch_operands = 0 : i64, tpu.core_type = #tpu.core_type<tc>, window_params = [{transform_indices = @transform_0, window_bounds = array<i64: 2>}, {transform_indices = @transform_1, window_bounds = array<i64: 1, 40, 256>}, {pipeline_mode = #tpu.pipeline_mode<synchronous>, transform_indices = @transform_2, window_bounds = array<i64: 8, 40>}, {pipeline_mode = #tpu.pipeline_mode<synchronous>, transform_indices = @transform_3, window_bounds = array<i64: 8, 1>}, {transform_indices = @transform_4, window_bounds = array<i64: 1, 8, 256>}, {transform_indices = @transform_5, window_bounds = array<i64: 1, 8, 128>}]} {
    %c0 = arith.constant 0 : index
    %c0_0 = arith.constant 0 : index
    %c0_1 = arith.constant 0 : index
    %0 = vector.load %arg3[%c0, %c0_0, %c0_1] : memref<1x40x256xf32, #tpu.memory_space<vmem>>, vector<1x40x256xf32>
    %1 = vector.shape_cast %0 : vector<1x40x256xf32> to vector<40x256xf32>
    %c0_2 = arith.constant 0 : index
    %2 = memref.load %arg2[%c0_2] : memref<2xf32, #tpu.memory_space<smem>>
    %3 = vector.broadcast %2 : f32 to vector<40x256xf32>
    %4 = arith.mulf %1, %3 : vector<40x256xf32>
    %5 = math.roundeven %4 : vector<40x256xf32>
    %6 = arith.truncf %5 : vector<40x256xf32> to vector<40x256xbf16>
    %c0_3 = arith.constant 0 : index
    %c0_4 = arith.constant 0 : index
    %7 = vector.load %arg4[%c0_3, %c0_4] : memref<8x40xbf16, #tpu.memory_space<vmem>>, vector<8x40xbf16>
    %cst = arith.constant dense<0.000000e+00> : vector<8x256xf32>
    %8 = tpu.matmul %7, %6, %cst {dimension_numbers = #tpu.dot_dimension_numbers<[1], [0], [0], [1], [0, 0, 1, 1], [], []>} : vector<8x40xbf16>, vector<40x256xbf16>, vector<8x256xf32> -> vector<8x256xf32>
    %c1 = arith.constant 1 : index
    %9 = memref.load %arg2[%c1] : memref<2xf32, #tpu.memory_space<smem>>
    %10 = vector.broadcast %9 : f32 to vector<8x256xf32>
    %11 = arith.mulf %8, %10 : vector<8x256xf32>
    %c0_5 = arith.constant 0 : index
    %c0_6 = arith.constant 0 : index
    %12 = vector.load %arg5[%c0_5, %c0_6] : memref<8x1xf32, #tpu.memory_space<vmem>>, vector<8x1xf32>
    %13 = vector.broadcast %12 : vector<8x1xf32> to vector<8x256xf32>
    %14 = arith.addf %11, %13 : vector<8x256xf32>
    %c0_7 = arith.constant 0 : index
    %c0_8 = arith.constant 0 : index
    %c0_9 = arith.constant 0 : index
    %15 = vector.load %arg6[%c0_7, %c0_8, %c0_9] : memref<1x8x256xf32, #tpu.memory_space<vmem>>, vector<1x8x256xf32>
    %16 = vector.shape_cast %15 : vector<1x8x256xf32> to vector<8x256xf32>
    %17 = vector.shape_cast %14 : vector<8x256xf32> to vector<1x8x256xf32>
    tpu.vector_store %arg6[%c0_7, %c0_8, %c0_9], %17 {strides = array<i32>} : memref<1x8x256xf32, #tpu.memory_space<vmem>>, vector<1x8x256xf32>,
    %c0_i32 = arith.constant 0 : i32
    %18 = arith.cmpi eq, %arg1, %c0_i32 : i32
    %19 = arith.extui %18 : i1 to i32
    %c0_i32_10 = arith.constant 0 : i32
    %20 = arith.cmpi ne, %19, %c0_i32_10 : i32
    scf.if %20 {
      %cst_19 = arith.constant 0.000000e+00 : f32
      %32 = vector.broadcast %cst_19 : f32 to vector<1x8x128xf32>
      %c0_20 = arith.constant 0 : index
      %c0_21 = arith.constant 0 : index
      %c0_22 = arith.constant 0 : index
      %33 = vector.load %arg7[%c0_20, %c0_21, %c0_22] : memref<1x8x128xf32, #tpu.memory_space<vmem>>, vector<1x8x128xf32>
      tpu.vector_store %arg7[%c0_20, %c0_21, %c0_22], %32 {strides = array<i32>} : memref<1x8x128xf32, #tpu.memory_space<vmem>>, vector<1x8x128xf32>,
    } else {
    }
    %c0_11 = arith.constant 0 : index
    %c0_12 = arith.constant 0 : index
    %c0_13 = arith.constant 0 : index
    %21 = vector.load %arg7[%c0_11, %c0_12, %c0_13] : memref<1x8x128xf32, #tpu.memory_space<vmem>>, vector<1x8x128xf32>
    %cst_14 = arith.constant 0.000000e+00 : f32
    %22 = vector.broadcast %cst_14 : f32 to vector<1x8x128xf32>
    %23 = math.absf %14 : vector<8x256xf32>
    %24 = vector.shape_cast %23 : vector<8x256xf32> to vector<1x8x256xf32>
    %cst_15 = arith.constant dense<0xFF800000> : vector<1xf32>
    %25 = vector.multi_reduction <maximumf>, %24, %cst_15 [1, 2] : vector<1x8x256xf32> to vector<1xf32>
    %26 = vector.shape_cast %25 : vector<1xf32> to vector<1x1x1xf32>
    %27 = vector.extract %26[0, 0, 0] : f32 from vector<1x1x1xf32>
    %28 = vector.broadcast %27 : f32 to vector<1x8x128xf32>
    %29 = arith.addf %22, %28 : vector<1x8x128xf32>
    %30 = arith.maximumf %21, %29 : vector<1x8x128xf32>
    %c0_16 = arith.constant 0 : index
    %c0_17 = arith.constant 0 : index
    %c0_18 = arith.constant 0 : index
    %31 = vector.load %arg7[%c0_16, %c0_17, %c0_18] : memref<1x8x128xf32, #tpu.memory_space<vmem>>, vector<1x8x128xf32>
    tpu.vector_store %arg7[%c0_16, %c0_17, %c0_18], %30 {strides = array<i32>} : memref<1x8x128xf32, #tpu.memory_space<vmem>>, vector<1x8x128xf32>,
    return
  }
  func.func @transform_0(%arg0: i32, %arg1: i32) -> i32 {
    %c0_i32 = arith.constant 0 : i32
    %c0_i32_0 = arith.constant 0 : i32
    return %c0_i32 : i32
  }
  func.func @transform_1(%arg0: i32, %arg1: i32) -> (i32, i32, i32) {
    %c0_i32 = arith.constant 0 : i32
    %c0_i32_0 = arith.constant 0 : i32
    return %arg0, %c0_i32, %arg1 : i32, i32, i32
  }
  func.func @transform_2(%arg0: i32, %arg1: i32) -> (i32, i32) {
    %c0_i32 = arith.constant 0 : i32
    %c0_i32_0 = arith.constant 0 : i32
    %c0_i32_1 = arith.constant 0 : i32
    return %c0_i32, %c0_i32_0 : i32, i32
  }
  func.func @transform_3(%arg0: i32, %arg1: i32) -> (i32, i32) {
    %c0_i32 = arith.constant 0 : i32
    %c0_i32_0 = arith.constant 0 : i32
    %c0_i32_1 = arith.constant 0 : i32
    return %c0_i32, %c0_i32_0 : i32, i32
  }
  func.func @transform_4(%arg0: i32, %arg1: i32) -> (i32, i32, i32) {
    %c0_i32 = arith.constant 0 : i32
    %c0_i32_0 = arith.constant 0 : i32
    return %arg0, %c0_i32, %arg1 : i32, i32, i32
  }
  func.func @transform_5(%arg0: i32, %arg1: i32) -> (i32, i32, i32) {
    %c0_i32 = arith.constant 0 : i32
    %c0_i32_0 = arith.constant 0 : i32
    %c0_i32_1 = arith.constant 0 : i32
    return %arg0, %c0_i32, %c0_i32_0 : i32, i32, i32
  }
}

</mosaic_0001>

<bundles_post_ra>
// kernel: _forward_jit.1
= control target key start
LH: loop header
LB: loop body
LE: loop exit
PB: predicated region body
PF: predicated region fallthrough
CT: control target
= control target key end

     0   :  { %s1316_s0 = inlined_call_operand.hbm [shape: f32[2], index: 0, kind: input, shape index: {}]   ;;  %s1317_s1 = inlined_call_operand.hbm [shape: f32[2,40,256], index: 1, kind: input, shape index: {}]   ;;  %s1318_s2 = inlined_call_operand.hbm [shape: bf16[8,40], index: 2, kind: input, shape index: {}]   ;;  %s1319_s3 = inlined_call_operand.hbm [shape: f32[8,1], index: 3, kind: input, shape index: {}]   ;;  %s1320_s4 = inlined_call_operand.hbm [shape: f32[2,8,256], index: 4, kind: output, shape index: {0}]   ;;  %s1321_s5 = inlined_call_operand.hbm [shape: f32[2,8,128], index: 5, kind: output, shape index: {1}]  }
   0x1   :  { %1326 = sst [smem:[#allocation18_spill]] %s1316_s0 }
   0x2   :  { %11 = vsyncpa [#allocation5], 0 }
   0x3   :  { %12 = vsyncpa [#allocation3], 0 }
   0x4   :  { %14 = vsyncpa [#allocation3 + $0x1], 0 }
   0x5   :  { %15 = vsyncpa [#allocation8], 0 }
   0x6   :  { %16 = vsyncpa [#allocation4], 0 }
   0x7   :  { %18 = vsyncpa [#allocation4 + $0x1], 0 }
   0x8   :  { %19 = vsyncpa [#allocation12], 0 }
   0x9   :  { %21 = vsyncpa [#allocation12 + $0x1], 0  ;;  %s1026_s18 = smov 0   ;;  %s1028_s19 = smov 0  }
   0xa   :  { %s1030_s20 = smov 0   ;;  %s1032_s21 = smov 0  }
   0xb   :  { %s1034_s22 = smov 0   ;;  %s1036_s23 = smov 0  }
   0xc LB: > { %s621_s24 = sadd.s32 4294967295, %s985_s23   ;;  %s622_s25 = sadd.s32 4294967294, %s985_s23   ;;  %s985_s23 = sphi %s1036_s23, %s27_s23   ;;  %s981_s22 = sphi %s1034_s22, %s1347_s22   ;;  %s977_s21 = sphi %s1032_s21, %s1346_s21   ;;  %s973_s20 = sphi %s1030_s20, %s1345_s20   ;;  %s969_s19 = sphi %s1028_s19, %s1344_s19   ;;  %s965_s18 = sphi %s1026_s18, %s1343_s18  }
   0xd   : > { %p82_p0 = scmp.ne.s32.totalorder %s969_s19, %s965_s18  ;;  %p1060_p1 = scmp.eq.s32.totalorder %s621_s24, 0 }
   0xe   : > { %p1064_p2 = scmp.eq.s32.totalorder %s621_s24, 1  ;;  %p156_p3 = scmp.eq.s32.totalorder %s622_s25, 1 }
   0xf   : > { %s1327_s26 = scalar_select %p1060_p1, 1, 0 }
  0x10   : > { %s1328_s27 = scalar_select %p1064_p2, 1, 0 }
  0x11   : > { %p1070_p4 = por %p1060_p1, %p82_p0  ;;  %p623_p5 = scmp.ge.s32.totalorder %s985_s23, 1 }
  0x12   : > { %p1075_p6 = por %p156_p3, %p82_p0  ;;  %p189_p7 = scmp.lt.s32.totalorder %s985_s23, 3 }
  0x13   : > { %s1329_s28 = scalar_select %p1070_p4, 1, 0 }
  0x14   : > { %s1330_s29 = scalar_select %p1075_p6, 1, 0 }
  0x15   : > { %p1080_p8 = pnand %p623_p5, %p189_p7  ;;  %s987_s6 = smov [#allocation7]  }
  0x16   : > { %s211_s7 = sshll.u32 %s987_s6, 4  ;;  %s988_s9 = smov [#allocation9]   ;;  %s212_s7 = int_to_ptr.vmem [resolvable:$true] %s211_s7 }
  0x17   : > { %s1331_s30 = scalar_select %p1080_p8, 1, 0 }
  0x18   : > { %p679_p10 = pneg %p1080_p8  ;;  %s222_s10 = sshll.u32 %s988_s9, 4  ;;  %s1093_s10 = int_to_ptr.vmem [resolvable:$true] %s222_s10 }
  0x19   : > { %s764_s13 = scalar_lea.hbm %s1318_s2, 64 }
  0x1a   : > { %p1089_p11 = pnand %p679_p10, %p1060_p1  ;;  %p765_p12 = scmp.ne.s32.totalorder %s1318_s2, %s764_s13 }
  0x1b   : > { %p771_p5 = scmp.lt.u32.totalorder %s764_s13, %s1318_s2 }
  0x1c   : > { %p1103_p13 = pneg %p1089_p11 }
  0x1e   : > { %p767_p0 = pnand %p1103_p13, %p765_p12 }
  0x20   : > { %p768_p3 = pneg %p767_p0 }
  0x22   : > { %p773_p7 = pnand %p771_p5, %p768_p3 }
  0x24   : > { %776 = shalt.err (!%p773_p7)
}
  0x25   : > { %s777_s25 = scalar_lea.vmem %s212_s7, 64  ;;  %p785_p4 = scmp.lt.s32.totalorder %s212_s7, %s212_s7 }
  0x26   : > { %p778_p10 = scmp.ne.s32.totalorder %s212_s7, %s777_s25  ;;  %p786_p1 = scmp.lt.s32.totalorder %s777_s25, %s777_s25 }
  0x28   : > { %p780_p9 = pnand %p778_p10, %p1103_p13  ;;  %p787_p8 = por %p786_p1, %p785_p4 }
  0x2a   : > { %p781_p6 = pneg %p780_p9 }
  0x2c   : > { %p788_p2 = pnand %p787_p8, %p781_p6 }
  0x2e   : > { %791 = shalt.err (!%p788_p2)
}
  0x2f   : > { %685 = dma.hbm_to_vmem [thread:$0]  (!%p1089_p11), %s1318_s2, 64, %s212_s7, [#allocation8]  }
  0x30   : > { %s1334_s0 = sld [smem:[#allocation18_spill]] }
  0x36   : > { %s792_s13 = scalar_lea.hbm %s1334_s0, 16 }
  0x37   : > { %p793_p9 = scmp.ne.s32.totalorder %s1334_s0, %s792_s13  ;;  %p799_p2 = scmp.lt.u32.totalorder %s792_s13, %s1334_s0 }
  0x39   : > { %p795_p12 = pnand %p793_p9, %p1103_p13 }
  0x3b   : > { %p796_p1 = pneg %p795_p12 }
  0x3d   : > { %p801_p4 = pnand %p799_p2, %p796_p1 }
  0x3f   : > { %804 = shalt.err (!%p801_p4)
}
  0x40   : > { %s989_s25 = smov [#allocation2]   ;;  %s805_s12 = scalar_lea.hbm %s1319_s3, 128 }
  0x41   : > { %682 = dma.hbm_to_smem (!%p1089_p11), %s1334_s0, 16, %s989_s25, [#allocation5]  }
  0x42   : > { %p806_p6 = scmp.ne.s32.totalorder %s1319_s3, %s805_s12  ;;  %p812_p3 = scmp.lt.u32.totalorder %s805_s12, %s1319_s3 }
  0x44   : > { %p808_p8 = pnand %p806_p6, %p1103_p13 }
  0x46   : > { %p809_p0 = pneg %p808_p8 }
  0x48   : > { %p814_p5 = pnand %p812_p3, %p809_p0 }
  0x4a   : > { %817 = shalt.err (!%p814_p5)
}
  0x4b   : > { %s818_s24 = scalar_lea.vmem %s1093_s10, 128  ;;  %p826_p12 = scmp.lt.s32.totalorder %s1093_s10, %s1093_s10 }
  0x4c   : > { %p819_p7 = scmp.ne.s32.totalorder %s1093_s10, %s818_s24  ;;  %p827_p1 = scmp.lt.s32.totalorder %s818_s24, %s818_s24 }
  0x4e   : > { %p821_p10 = pnand %p819_p7, %p1103_p13  ;;  %p828_p2 = por %p827_p1, %p826_p12 }
  0x50   : > { %p822_p9 = pneg %p821_p10 }
  0x52   : > { %p829_p4 = pnand %p828_p2, %p822_p9 }
  0x54   : > { %832 = shalt.err (!%p829_p4)
}
  0x55   : > { %688 = dma.hbm_to_vmem [thread:$0]  (!%p1089_p11), %s1319_s3, 128, %s1093_s10, [#allocation8]  }
  0x56   : > { %s69_s16 = sadd.s32 1, %s973_s20  ;;  %s39_s6 = sadd.s32 1, %s981_s22 }
  0x57   : > { %p76_p13 = scmp.ne.s32.totalorder %s973_s20, %s969_s19  ;;  %p41_p6 = scmp.ge.s32.totalorder %s39_s6, 2 }
  0x58   : > { %p77_p8 = scmp.eq.s32.totalorder %s985_s23, 0  ;;  %p1335_p0 = scmp.ne.s32.totalorder %s1328_s27, 0 }
  0x59   : > { %p703_p5 = scmp.lt.s32.totalorder %s985_s23, 2  ;;  %s1349_s6 = smov (%p41_p6, %s39_s6), 0 }
  0x5a   : > { %p1165_p3 = por %p1335_p0, %p76_p13  ;;  %p78_p7 = por %p77_p8, %p76_p13 }
  0x5b   : > { %s233_s9 = sand.u32 1, %s973_s20   ;;  %s64_s11 = ssub.s32 %s981_s22, %s1349_s6 }
  0x5c   : > { %p67_p10 = scmp.eq.s32.totalorder %s64_s11, 0  ;;  %s646_s10 = smul.u32 80, %s233_s9 }
  0x5d   : > { %s647_s12 = smul.u32 1280, %s981_s22  ;;  %p1176_p11 = pnand %p703_p5, %p78_p7 }
  0x5e   : > { %s1181_s27 = scalar_select %p67_p10, %s973_s20, %s69_s16  }
  0x5f   : > { %s1186_s17 = scalar_lea.hbm %s1317_s1, %s647_s12  ;;  %s237_s24 = scalar_lea.vmem [#allocation6], %s646_s10 }
  0x60   : > { %s246_s25 = sshll.u32 %s237_s24, 4  ;;  %s1190_s7 = scalar_lea.sflag [#allocation3], %s233_s9  ;;  %s1188_s25 = int_to_ptr.vmem [resolvable:$true] %s246_s25 }
  0x61   : > { %s833_s11 = scalar_lea.hbm %s1186_s17, 1280  ;;  %p835_p12 = pneg %p1176_p11 }
  0x62   : > { %p834_p9 = scmp.ne.s32.totalorder %s1186_s17, %s833_s11  ;;  %s838_s15 = scalar_lea.hbm %s1317_s1, 2560 }
  0x63   : > { %p839_p4 = scmp.lt.u32.totalorder %s1186_s17, %s1317_s1  ;;  %p840_p13 = scmp.lt.u32.totalorder %s838_s15, %s833_s11 }
  0x64   : > { %p836_p1 = pnand %p835_p12, %p834_p9  ;;  %p842_p8 = scmp.lt.u32.totalorder %s833_s11, %s1186_s17 }
  0x65   : > { %p841_p6 = por %p840_p13, %p839_p4 }
  0x66   : > { %p837_p2 = pneg %p836_p1 }
  0x67   : > { %p843_p0 = por %p842_p8, %p841_p6 }
  0x69   : > { %p844_p5 = pnand %p843_p0, %p837_p2 }
  0x6b   : > { %847 = shalt.err (!%p844_p5)
}
  0x6c   : > { %s848_s9 = scalar_lea.vmem %s1188_s25, 1280  ;;  %s990_s10 = smov [#allocation6]  }
  0x6d   : > { %p849_p7 = scmp.ne.s32.totalorder %s1188_s25, %s848_s9  ;;  %s853_s24 = sshll.u32 %s990_s10, 4  ;;  %s854_s24 = int_to_ptr.vmem [resolvable:$false] %s853_s24 }
  0x6e   : > { %s855_s0 = scalar_lea.vmem %s854_s24, 2560  ;;  %p856_p1 = scmp.lt.s32.totalorder %s1188_s25, %s854_s24 }
  0x6f   : > { %p851_p10 = pnand %p849_p7, %p835_p12  ;;  %p857_p4 = scmp.lt.s32.totalorder %s855_s0, %s848_s9 }
  0x71   : > { %p852_p9 = pneg %p851_p10  ;;  %p858_p13 = por %p857_p4, %p856_p1 }
  0x73   : > { %p859_p6 = pnand %p858_p13, %p852_p9 }
  0x75   : > { %862 = shalt.err (!%p859_p6)
}
  0x76   : > { %s991_s11 = smov 256   ;;  %s992_s16 = smov 16  }
  0x77   : > { %692 = dma.hbm_to_vmem [thread:$0]  (!%p1176_p11), %s1186_s17, 1280, %s1188_s25, %s1190_s7, %s991_s11, %s991_s11, %s992_s16  }
  0x78   : > { %p1338_p12 = scmp.ne.s32.totalorder %s1331_s30, 0 }
  0x79   : > { %p1339_p2 = scmp.ne.s32.totalorder (!%p1338_p12), %s1327_s26, 0 }
  0x7a   : > { %258 = sbr.rel (%p1338_p12) target bundleno = 606 (0x25e), region = 36 }
  0x81   : > { %944 = dma.done.wait (%p1339_p2), [#allocation5], 16  }
  0x82   : > { %946 = vsyncadd (%p1339_p2), [#allocation5], 4294967280  ;;  %s1225_s12 = sand.u32 1, %s969_s19   ;;  %p1340_p8 = scmp.ne.s32.totalorder %s1329_s28, 0 }
  0x83   : > { %s648_s15 = smul.u32 80, %s1225_s12  ;;  %s265_s13 = scalar_lea.sflag [#allocation3], %s1225_s12 }
  0x85   : > { %s268_s9 = scalar_lea.vmem [#allocation6], %s648_s15 }
  0x86   : > { %948 = dma.done.wait (%p1340_p8), %s265_s13, 1280  }
  0x87   : > { %950 = vsyncadd (%p1340_p8), %s265_s13, 4294966016 }
  0x88   : > { %952 = dma.done.wait (%p1339_p2), [#allocation8], 192  }
  0x89   : > { %954 = vsyncadd (%p1339_p2), [#allocation8], 4294967104 }
  0x8a   : > { %281 = sfence }
  0x8b   : > { %s322_s30 = sld [smem:[#allocation2]]  ;;  %v993_v0 = vmov 0   ;;  %v313_v1 = vld [vmem:[%s268_s9 + $0x8] sm:$0xff]  ;;  %v315_v2 = vld [vmem:[%s268_s9 + $0x18] sm:$0xff]  ;;  %v312_v4 = vld [vmem:[%s268_s9] sm:$0xff]  ;;  %vm355_vm0 = vcmask 1043456  }
  0x8c   : > { %394 = vmatprep.mubr.bf16.mxu0 %v993_v0  ;;  %763 = vset.pattern.permute.xlu0 %v993_v0  ;;  %v407_v3 = vld [vmem:[#allocation9] sm:$0xff]  ;;  %v350_v40 = vld [vmem:[#allocation7] sm:$0xf]  ;;  %vm351_vm1 = vcmask 326656   ;;  %s637_s26 = sld [smem:[#allocation2 + $0x1]]  ;;  %s633_s28 = sshll.u32 %s1225_s12, 4 }
  0x8d   : > { %v314_v5 = vld [vmem:[%s268_s9 + $0x10] sm:$0xff]  ;;  %v317_v6 = vld [vmem:[%s268_s9 + $0x28] sm:$0xff]  ;;  %410 = vperm.xlu0 %763, %v407_v3   ;;  %v319_v7 = vld [vmem:[%s268_s9 + $0x38] sm:$0xff]  ;;  %s301_s14 = scalar_lea.vmem [#allocation10], %s633_s28  ;;  %s645_s17 = sshll.u32 %s977_s21, 8 }
  0x8e   : > { %v316_v8 = vld [vmem:[%s268_s9 + $0x20] sm:$0xff]  ;;  %v318_v9 = vld [vmem:[%s268_s9 + $0x30] sm:$0xff]  ;;  %v321_v19 = vld [vmem:[%s268_s9 + $0x48] sm:$0xff]  ;;  %s461_s25 = sshll.u32 %s301_s14, 4  ;;  %s1242_s24 = scalar_lea.hbm %s1320_s4, %s645_s17  ;;  %s462_s25 = int_to_ptr.vmem [resolvable:$true] %s461_s25 }
  0x8f   : > { %v320_v20 = vld [vmem:[%s268_s9 + $0x40] sm:$0xff]  ;;  %s440_s0 = scalar_lea.sflag [#allocation4], %s1225_s12  ;;  %s863_s11 = scalar_lea.vmem %s462_s25, 256 }
  0x90   : > { %p864_p11 = scmp.ne.s32.totalorder %s462_s25, %s863_s11  ;;  %s994_s16 = smov [#allocation10]  }
  0x91   : > { %v323_v10 = vstv %s322_s30  ;;  %s867_s15 = sshll.u32 %s994_s16, 4  ;;  %s868_s15 = int_to_ptr.vmem [resolvable:$false] %s867_s15 }
  0x92   : > { %v325_v11 = vmul.f32 %v323_v10, %v313_v1  ;;  %v327_v12 = vmul.f32 %v323_v10, %v315_v2  ;;  %v324_v13 = vmul.f32 %v323_v10, %v312_v4  ;;  %v326_v14 = vmul.f32 %v323_v10, %v314_v5  ;;  %p865_p0 = pnand %p864_p11, %p1165_p3  ;;  %s869_s13 = scalar_lea.vmem %s868_s15, 512 }
  0x93   : > { %v329_v15 = vmul.f32 %v323_v10, %v317_v6  ;;  %v331_v16 = vmul.f32 %v323_v10, %v319_v7  ;;  %v328_v17 = vmul.f32 %v323_v10, %v316_v8  ;;  %v330_v18 = vmul.f32 %v323_v10, %v318_v9  ;;  %p870_p7 = scmp.lt.s32.totalorder %s462_s25, %s868_s15  ;;  %p871_p10 = scmp.lt.s32.totalorder %s869_s13, %s863_s11 }
  0x94   : > { %v650_v21 = vround.rtne.f32 %v325_v11  ;;  %v652_v22 = vround.rtne.f32 %v327_v12  ;;  %v649_v23 = vround.rtne.f32 %v324_v13  ;;  %v651_v24 = vround.rtne.f32 %v326_v14  ;;  %p866_p5 = pneg %p865_p0 }
  0x95   : > { %v654_v25 = vround.rtne.f32 %v329_v15  ;;  %v656_v26 = vround.rtne.f32 %v331_v16  ;;  %v653_v27 = vround.rtne.f32 %v328_v17  ;;  %v655_v28 = vround.rtne.f32 %v330_v18  ;;  %p872_p9 = por %p871_p10, %p870_p7 }
  0x96   : > { %v345_v29 = vpack.c.bf16 %v652_v22, %v650_v21  ;;  %v344_v30 = vpack.c.bf16 %v651_v24, %v649_v23  ;;  %v333_v31 = vmul.f32 %v323_v10, %v321_v19  ;;  %v332_v32 = vmul.f32 %v323_v10, %v320_v20 }
  0x97   : > { %v347_v33 = vpack.c.bf16 %v656_v26, %v654_v25  ;;  %v346_v36 = vpack.c.bf16 %v655_v28, %v653_v27  ;;  %v404_v41 = vstv %s637_s26  ;;  %p873_p1 = pnand %p872_p9, %p866_p5 }
  0x98   : > { %362 = vmatprep.subr.bf16.mxu0 %v345_v29  ;;  %v658_v34 = vround.rtne.f32 %v333_v31  ;;  %v657_v35 = vround.rtne.f32 %v332_v32 }
  0x99   : > { %363 = vmatpush1.bf16.msra.mxu0 %v344_v30 }
  0x9a   : > { %364 = vmatprep.subr.bf16.mxu0 %v347_v33  ;;  %v349_v37 = vpack.c.bf16 %v658_v34, %v658_v34  ;;  %v348_v38 = vpack.c.bf16 %v657_v35, %v657_v35 }
  0x9c   : > { %v357_v39 = vsel %vm355_vm0, %v348_v38, 0 }
  0x9d   : > { %365 = vmatpush1.bf16.msra.mxu0 %v346_v36 }
  0x9e   : > { %635 = vmatprep.subr.msk.bf16.mxu0 %vm355_vm0, %v349_v37 }
  0xa1   : > { %367 = vmatpush1.bf16.msra.mxu0 %v357_v39 }
  0xa4   : > { %636 = vmatmul.mubr.msk.bf16.vlgmr.msra.gmra.mrb[0].mxu0 %vm351_vm1, %v350_v40 }
 0x10c   : > { %v411_v43 = vpop.permute.xlu0 %410 }
 0x177   : > { %v396_v42 = vpop.f32.mrb[0].mxu0 }
 0x178   : > { %v405_v44 = vmul.f32 %v404_v41, %v396_v42  ;;  %v398_v45 = vpop.f32.mrb[1].mxu0 }
 0x179   : > { %v406_v46 = vmul.f32 %v404_v41, %v398_v45  ;;  %v400_v47 = vpop.f32.mrb[2].mxu0 }
 0x17a   : > { %v413_v48 = vadd.f32 %v411_v43, %v405_v44  ;;  %v401_v49 = vpop.f32.mrb[3].mxu0 }
 0x17b   : > { %v414_v50 = vadd.f32 %v411_v43, %v406_v46 }
 0x17c   : > { %415 = vst [vmem:[%s301_s14] sm:$0xff] %v413_v48  ;;  %v423_v51 = vand.u32 2147483647, %v413_v48 }
 0x17d   : > { %416 = vst [vmem:[%s301_s14 + $0x8] sm:$0xff] %v414_v50  ;;  %v424_v52 = vand.u32 2147483647, %v414_v50 }
 0x17f   : > { %v425_v53 = vmax.f32.f32 %v423_v51, %v424_v52 }
 0x181   : > { %426 = vmax.xlane.f32.xlu0 %v425_v53 }
 0x182   : > { %876 = shalt.err (!%p873_p1)
}
 0x183   : > { %s877_s9 = scalar_lea.hbm %s1242_s24, 256  ;;  %s881_s28 = scalar_lea.hbm %s1320_s4, 512 }
 0x184   : > { %p878_p4 = scmp.ne.s32.totalorder %s1242_s24, %s877_s9  ;;  %p882_p12 = scmp.lt.u32.totalorder %s1242_s24, %s1320_s4 }
 0x185   : > { %p883_p2 = scmp.lt.u32.totalorder %s881_s28, %s877_s9  ;;  %p885_p11 = scmp.lt.u32.totalorder %s877_s9, %s1242_s24 }
 0x186   : > { %p879_p13 = pnand %p878_p4, %p1165_p3 }
 0x187   : > { %p884_p8 = por %p883_p2, %p882_p12 }
 0x188   : > { %p880_p6 = pneg %p879_p13 }
 0x189   : > { %p886_p0 = por %p885_p11, %p884_p8 }
 0x18b   : > { %p887_p5 = pnand %p886_p0, %p880_p6 }
 0x18d   : > { %890 = shalt.err (!%p887_p5)
}
 0x18e   : > { %675 = dma.vmem_to_hbm [thread:$0]  (%p1165_p3), %s462_s25, 256, %s1242_s24, %s440_s0  }
 0x18f   : > { %s634_s7 = sshll.u32 %s1225_s12, 3  ;;  %s642_s10 = sshll.u32 %s977_s21, 7 }
 0x190   : > { %s308_s11 = scalar_lea.vmem [#allocation11], %s634_s7  ;;  %s1267_s25 = scalar_lea.hbm %s1321_s5, %s642_s10 }
 0x191   : > { %s474_s16 = sshll.u32 %s308_s11, 4  ;;  %s445_s24 = scalar_lea.sflag [#allocation12], %s1225_s12  ;;  %s1269_s16 = int_to_ptr.vmem [resolvable:$true] %s474_s16 }
 0x192   : > { %s891_s0 = scalar_lea.vmem %s1269_s16, 128  ;;  %s995_s21 = smov [#allocation11]  }
 0x193   : > { %p892_p7 = scmp.ne.s32.totalorder %s1269_s16, %s891_s0  ;;  %s895_s30 = sshll.u32 %s995_s21, 4  ;;  %s896_s30 = int_to_ptr.vmem [resolvable:$false] %s895_s30 }
 0x194   : > { %s897_s26 = scalar_lea.vmem %s896_s30, 256  ;;  %p898_p1 = scmp.lt.s32.totalorder %s1269_s16, %s896_s30 }
 0x195   : > { %p893_p10 = pnand %p892_p7, %p1165_p3  ;;  %p899_p4 = scmp.lt.s32.totalorder %s897_s26, %s891_s0 }
 0x197   : > { %p894_p9 = pneg %p893_p10  ;;  %p900_p13 = por %p899_p4, %p898_p1 }
 0x199   : > { %p901_p6 = pnand %p900_p13, %p894_p9 }
 0x20e   : > { %v427_v54 = vpop.xlane.xlu0 %426 }
 0x20f   : > { %v428_v55 = vrot.slane %v427_v54, 4 }
 0x211   : > { %v429_v56 = vmax.f32 %v427_v54, %v428_v55 }
 0x213   : > { %v430_v57 = vrot.slane %v429_v56, 2 }
 0x215   : > { %v431_v58 = vmax.f32 %v429_v56, %v430_v57 }
 0x217   : > { %v432_v59 = vrot.slane %v431_v58, 1 }
 0x219   : > { %v433_v60 = vmax.f32 %v431_v58, %v432_v59 }
 0x21b   : > { %659 = vpush %v433_v60 }
 0x24c   : > { %s660_s15 = spop %659 }
 0x24d   : > { %v435_v61 = vstv %s660_s15 }
 0x24e   : > { %v437_v62 = vmax.f32 %v435_v61, 0.0 }
 0x250   : > { %438 = vst [vmem:[%s308_s11] sm:$0xff] %v437_v62 }
 0x251   : > { %904 = shalt.err (!%p901_p6)
}
 0x252   : > { %s905_s12 = scalar_lea.hbm %s1267_s25, 128  ;;  %s909_s17 = scalar_lea.hbm %s1321_s5, 256 }
 0x253   : > { %p906_p12 = scmp.ne.s32.totalorder %s1267_s25, %s905_s12  ;;  %p910_p11 = scmp.lt.u32.totalorder %s1267_s25, %s1321_s5 }
 0x254   : > { %p911_p0 = scmp.lt.u32.totalorder %s909_s17, %s905_s12  ;;  %p913_p7 = scmp.lt.u32.totalorder %s905_s12, %s1267_s25 }
 0x255   : > { %p907_p2 = pnand %p906_p12, %p1165_p3 }
 0x256   : > { %p912_p5 = por %p911_p0, %p910_p11 }
 0x257   : > { %p908_p8 = pneg %p907_p2 }
 0x258   : > { %p914_p10 = por %p913_p7, %p912_p5 }
 0x25a   : > { %p915_p9 = pnand %p914_p10, %p908_p8 }
 0x25c   : > { %918 = shalt.err (!%p915_p9)
}
 0x25d   : > { %676 = dma.vmem_to_hbm [thread:$0]  (%p1165_p3), %s1269_s16, 128, %s1267_s25, %s445_s24  }
 0x25e PF: > { %s486_s11 = sand.u32 1, %s965_s18   ;;  %p1341_p1 = scmp.ne.s32.totalorder %s1330_s29, 0 }
 0x25f   : > { %p1342_p4 = scmp.ge.s32.totalorder %s985_s23, 2  ;;  %s487_s15 = scalar_lea.sflag [#allocation4], %s486_s11 }
 0x261   : > { %p694_p13 = pnand %p1342_p4, %p1341_p1 }
 0x263   : > { %956 = dma.done.wait (!%p694_p13), %s487_s15, 256  }
 0x264   : > { %958 = vsyncadd (!%p694_p13), %s487_s15, 4294967040  ;;  %s496_s13 = scalar_lea.sflag [#allocation12], %s486_s11 }
 0x265   : > { %960 = dma.done.wait (!%p694_p13), %s496_s13, 128  }
 0x266   : > { %962 = vsyncadd (!%p694_p13), %s496_s13, 4294967168  ;;  %s27_s23 = sadd.s32 1, %s985_s23   ;;  %s1343_s18 = smov %s969_s19 }
 0x267   : > { %p24_p6 = scmp.ge.s32.totalorder %s27_s23, 4   ;;  %s1344_s19 = smov %s973_s20 }
 0x268   : > { %s1345_s20 = smov %s1181_s27  ;;  %s1346_s21 = smov %s981_s22 }
 0x269   : > { %s1347_s22 = smov %s1349_s6  ;;  %26 = sbr.rel (!%p24_p6) target bundleno = 12 (0xc), region = 115 }
 0x270   :  { %501 = vsyncpa [#allocation3], 1 }
 0x271   :  { %503 = vsyncpa [#allocation3 + $0x1], 1 }
 0x272   :  { %504 = vsyncpa [#allocation8], 1 }
 0x273   :  { %505 = vsyncpa [#allocation4], 1 }
 0x274   :  { %507 = vsyncpa [#allocation4 + $0x1], 1 }
 0x275   :  { %508 = vsyncpa [#allocation12], 1 }
 0x276   :  { %510 = vsyncpa [#allocation12 + $0x1], 1 }
 0x277   :  { %511 = vsyncpa [#allocation5], 1 }
 0x278   :  { %513 = vsyncpa [#allocation5 + $0x1], 1 }

</bundles_post_ra>
